<compile_context>
chip_gen: v7x
topology: tpu7x:2x2x1
jax: 0.10.0
libtpu: 0.0.40
codegen_flags: <defaults>
</compile_context>

<pallas_src>
import math

import jax
import jax.numpy as jnp
from jax.experimental import pallas as pl
from jax.experimental.pallas import tpu as pltpu

IN1, HID, OUT = 4, 40, 2      # NoisyLinear(4, 40) -> ReLU -> NoisyLinear(40, 2)
IN_PAD = 8                    # 4 features + 1 ones-row + 3 zero rows (sublane pad)
HID_PAD = 48                  # 40 hidden + 1 ones-carrier row + pad to multiple of 8
OUT_PAD = 8                   # 2 logits + sublane pad
LANES = 128                   # TPU lane width (batch lives on lanes)
MAX_TB = 2048                 # max batch tile (lane dim) per grid step


# ---------------------------------------------------------------------------
# Kernel
# ---------------------------------------------------------------------------
def noisynet2_kernel(x_ref, w1_ref, w2_ref, out_ref):
    x = x_ref[...]                                   # (8, tb)   batch in lanes
    w1 = w1_ref[...]                                 # (48, 8)   W1_eff | b1_eff | 1
    w2 = w2_ref[...]                                 # (8, 48)   W2_eff | b2_eff

    # Layer 1 + ReLU.  Row 4 of x is ones, so column 4 of w1 adds b1_eff;
    # row 40 of the result becomes relu(1) == 1 (carries b2 through layer 2).
    h = jnp.maximum(jnp.dot(w1, x, preferred_element_type=jnp.float32), 0.0)  # (48, tb)

    # Layer 2.  Column 40 of w2 (= b2_eff) multiplies the ones row of h.
    out_ref[...] = jnp.dot(w2, h, preferred_element_type=jnp.float32)         # (8, tb)


# ---------------------------------------------------------------------------
# Wrapper
# ---------------------------------------------------------------------------
def _batch_tiling(batch):
    """Pick (tile, padded_batch): pad batch up to big lane-dense tiles instead of
    degenerating to tiny divisor tiles."""
    b_pad = -(-batch // LANES) * LANES               # lane-align
    if b_pad >= 1024:
        b_pad = -(-b_pad // 512) * 512               # keep tiles >= 512 for large B
    for tb in (MAX_TB, 1024, 512):
        if b_pad % tb == 0:
            return tb, b_pad
    return b_pad, b_pad                              # small batch: one full block


def _dimension_semantics(num_tiles):
    """Use CORE_PARALLEL only on v7x (2 TCs/chip) and only if there is >1 tile."""
    kind = ""
    try:
        kind = jax.devices()[0].device_kind.lower()
    except Exception:
        pass
    if "v7" in kind and num_tiles >= 2:
        return (pltpu.CORE_PARALLEL,)
    return ("parallel",)


def noisynet2_forward(x, w1_pack, w2_pack):
    """x: (B, 4) fp32; packed effective params from pack_params(). Returns (B, 2)."""
    batch = x.shape[0]
    tb, b_pad = _batch_tiling(batch)
    grid = (b_pad // tb,)

    # Batch-in-lanes slab with homogeneous ones-row (folds b1 into the matmul).
    xt = jnp.zeros((IN_PAD, b_pad), jnp.float32)
    xt = xt.at[:IN1, :batch].set(x.T)
    xt = xt.at[IN1, :].set(1.0)

    out_t = pl.pallas_call(
        noisynet2_kernel,
        out_shape=jax.ShapeDtypeStruct((OUT_PAD, b_pad), jnp.float32),
        grid_spec=pltpu.PrefetchScalarGridSpec(
            num_scalar_prefetch=0,
            grid=grid,
            in_specs=[
                pl.BlockSpec((IN_PAD, tb), lambda i: (0, i)),          # x tile
                pl.BlockSpec((HID_PAD, IN_PAD), lambda i: (0, 0)),     # layer-1 slab (constant)
                pl.BlockSpec((OUT_PAD, HID_PAD), lambda i: (0, 0)),    # layer-2 slab (constant)
            ],
            out_specs=pl.BlockSpec((OUT_PAD, tb), lambda i: (0, i)),
        ),
        compiler_params=pltpu.CompilerParams(
            dimension_semantics=_dimension_semantics(grid[0])),
    )(xt, w1_pack, w2_pack)

    # TODO(synk): downstream consumers could take the (2, B) transposed layout
    # directly and skip this wrapper transpose entirely.
    return out_t[:OUT, :batch].T


# ---------------------------------------------------------------------------
# Parameter construction (torch-like layout) + packing (kernel layout)
# ---------------------------------------------------------------------------
def _factorized_noise(key, n):
    """f(eps) = sign(eps) * sqrt(|eps|), standard NoisyNet noise transform."""
    eps = jax.random.normal(key, (n,), dtype=jnp.float32)
    return jnp.sign(eps) * jnp.sqrt(jnp.abs(eps))


def init_noisy_linear(key, in_features, out_features, sigma_init=0.5):
    """NoisyLinear params in torch layout: W (out,in), b (out,)."""
    k_mu_w, k_mu_b, k_eps_in, k_eps_out = jax.random.split(key, 4)
    bound = 1.0 / math.sqrt(in_features)
    w_mu = jax.random.uniform(
        k_mu_w, (out_features, in_features), jnp.float32, -bound, bound)
    b_mu = jax.random.uniform(
        k_mu_b, (out_features,), jnp.float32, -bound, bound)
    w_sigma = jnp.full((out_features, in_features),
                       sigma_init / math.sqrt(in_features), jnp.float32)
    b_sigma = jnp.full((out_features,),
                       sigma_init / math.sqrt(in_features), jnp.float32)
    eps_in = _factorized_noise(k_eps_in, in_features)      # (in,)
    eps_out = _factorized_noise(k_eps_out, out_features)   # (out,)
    w_eps = jnp.outer(eps_out, eps_in)                     # (out, in)
    b_eps = eps_out                                        # (out,)
    return dict(w_mu=w_mu, w_sigma=w_sigma, w_eps=w_eps,
                b_mu=b_mu, b_sigma=b_sigma, b_eps=b_eps)


def make_params(key):
    k1, k2 = jax.random.split(key)
    l1 = init_noisy_linear(k1, IN1, HID)
    l2 = init_noisy_linear(k2, HID, OUT)
    return dict(
        w1_mu=l1["w_mu"], w1_sigma=l1["w_sigma"], w1_eps=l1["w_eps"],
        b1_mu=l1["b_mu"], b1_sigma=l1["b_sigma"], b1_eps=l1["b_eps"],
        w2_mu=l2["w_mu"], w2_sigma=l2["w_sigma"], w2_eps=l2["w_eps"],
        b2_mu=l2["b_mu"], b2_sigma=l2["b_sigma"], b2_eps=l2["b_eps"],
    )


def pack_params(p):
    """Pre-compose effective weights (mu + sigma*eps) and pack them into two tiny
    zero-filled slabs in the kernel's batch-in-lanes layout.  Pure layout work;
    redo only when the noise (eps) is resampled (NoisyNet2.sample())."""
    w1_eff = p["w1_mu"] + p["w1_sigma"] * p["w1_eps"]       # (40, 4)
    b1_eff = p["b1_mu"] + p["b1_sigma"] * p["b1_eps"]       # (40,)
    w2_eff = p["w2_mu"] + p["w2_sigma"] * p["w2_eps"]       # (2, 40)
    b2_eff = p["b2_mu"] + p["b2_sigma"] * p["b2_eps"]       # (2,)

    w1s = jnp.zeros((HID_PAD, IN_PAD), jnp.float32)
    w1s = w1s.at[:HID, :IN1].set(w1_eff)                    # W1_eff (out, in)
    w1s = w1s.at[:HID, IN1].set(b1_eff)                     # bias column (x ones-row)
    w1s = w1s.at[HID, IN1].set(1.0)                         # h row 40 == 1 after ReLU

    w2s = jnp.zeros((OUT_PAD, HID_PAD), jnp.float32)
    w2s = w2s.at[:OUT, :HID].set(w2_eff)                    # W2_eff (out, in)
    w2s = w2s.at[:OUT, HID].set(b2_eff)                     # b2 picked up via ones row
    return w1s, w2s


# ---------------------------------------------------------------------------
# Plain-JAX reference (torch semantics) for correctness checking
# ---------------------------------------------------------------------------
def reference_forward(x, p):
    w1 = p["w1_mu"] + p["w1_sigma"] * p["w1_eps"]
    b1 = p["b1_mu"] + p["b1_sigma"] * p["b1_eps"]
    h = jnp.maximum(x @ w1.T + b1, 0.0)
    w2 = p["w2_mu"] + p["w2_sigma"] * p["w2_eps"]
    b2 = p["b2_mu"] + p["b2_sigma"] * p["b2_eps"]
    return h @ w2.T + b2


if __name__ == "__main__":
    key = jax.random.PRNGKey(0)
    k_x, k_p = jax.random.split(key)

    params = make_params(k_p)
    w1_pack, w2_pack = pack_params(params)

    for batch in (2, 130):   # small; 130 also exercises the lane-padding path
        xb = jax.random.normal(jax.random.fold_in(k_x, batch), (batch, IN1),
                               dtype=jnp.float32)   # CartPole state dim = 4
        out = noisynet2_forward(xb, w1_pack, w2_pack)
        out = jax.block_until_ready(out)

        ref = reference_forward(xb, params)
        assert out.shape == (batch, OUT), out.shape
        assert jnp.allclose(out, ref, atol=1e-5, rtol=1e-5), (out, ref)

    print("KERNEL_OK")
</pallas_src>

<mosaic_0001>
module attributes {stable_mosaic.version = 11 : i64} {
  func.func @noisynet2_kernel(%arg0: i32, %arg1: memref<8x128xf32, #tpu.memory_space<vmem>>, %arg2: memref<48x8xf32, #tpu.memory_space<vmem>>, %arg3: memref<8x48xf32, #tpu.memory_space<vmem>>, %arg4: memref<8x128xf32, #tpu.memory_space<vmem>>) attributes {dimension_semantics = [#tpu.dimension_semantics<parallel>], iteration_bounds = array<i64: 1>, scalar_prefetch = 0 : i64, scratch_operands = 0 : i64, tpu.core_type = #tpu.core_type<tc>, window_params = [{transform_indices = @transform_0, window_bounds = array<i64: 8, 128>}, {pipeline_mode = #tpu.pipeline_mode<synchronous>, transform_indices = @transform_1, window_bounds = array<i64: 48, 8>}, {pipeline_mode = #tpu.pipeline_mode<synchronous>, transform_indices = @transform_2, window_bounds = array<i64: 8, 48>}, {transform_indices = @transform_3, window_bounds = array<i64: 8, 128>}]} {
    %c0 = arith.constant 0 : index
    %c0_0 = arith.constant 0 : index
    %0 = vector.load %arg1[%c0, %c0_0] : memref<8x128xf32, #tpu.memory_space<vmem>>, vector<8x128xf32>
    %c0_1 = arith.constant 0 : index
    %c0_2 = arith.constant 0 : index
    %1 = vector.load %arg2[%c0_1, %c0_2] : memref<48x8xf32, #tpu.memory_space<vmem>>, vector<48x8xf32>
    %c0_3 = arith.constant 0 : index
    %c0_4 = arith.constant 0 : index
    %2 = vector.load %arg3[%c0_3, %c0_4] : memref<8x48xf32, #tpu.memory_space<vmem>>, vector<8x48xf32>
    %cst = arith.constant dense<0.000000e+00> : vector<48x128xf32>
    %3 = tpu.matmul %1, %0, %cst {dimension_numbers = #tpu.dot_dimension_numbers<[1], [0], [0], [1], [0, 0, 1, 1], [], []>} : vector<48x8xf32>, vector<8x128xf32>, vector<48x128xf32> -> vector<48x128xf32>
    %cst_5 = arith.constant 0.000000e+00 : f32
    %4 = vector.broadcast %cst_5 : f32 to vector<48x128xf32>
    %5 = arith.maximumf %3, %4 : vector<48x128xf32>
    %cst_6 = arith.constant dense<0.000000e+00> : vector<8x128xf32>
    %6 = tpu.matmul %2, %5, %cst_6 {dimension_numbers = #tpu.dot_dimension_numbers<[1], [0], [0], [1], [0, 0, 1, 1], [], []>} : vector<8x48xf32>, vector<48x128xf32>, vector<8x128xf32> -> vector<8x128xf32>
    %c0_7 = arith.constant 0 : index
    %c0_8 = arith.constant 0 : index
    %7 = vector.load %arg4[%c0_7, %c0_8] : memref<8x128xf32, #tpu.memory_space<vmem>>, vector<8x128xf32>
    tpu.vector_store %arg4[%c0_7, %c0_8], %6 {strides = array<i32>} : memref<8x128xf32, #tpu.memory_space<vmem>>, vector<8x128xf32>,
    return
  }
  func.func @transform_0(%arg0: i32) -> (i32, i32) {
    %c0_i32 = arith.constant 0 : i32
    %c0_i32_0 = arith.constant 0 : i32
    return %c0_i32, %arg0 : i32, i32
  }
  func.func @transform_1(%arg0: i32) -> (i32, i32) {
    %c0_i32 = arith.constant 0 : i32
    %c0_i32_0 = arith.constant 0 : i32
    %c0_i32_1 = arith.constant 0 : i32
    return %c0_i32, %c0_i32_0 : i32, i32
  }
  func.func @transform_2(%arg0: i32) -> (i32, i32) {
    %c0_i32 = arith.constant 0 : i32
    %c0_i32_0 = arith.constant 0 : i32
    %c0_i32_1 = arith.constant 0 : i32
    return %c0_i32, %c0_i32_0 : i32, i32
  }
  func.func @transform_3(%arg0: i32) -> (i32, i32) {
    %c0_i32 = arith.constant 0 : i32
    %c0_i32_0 = arith.constant 0 : i32
    return %c0_i32, %arg0 : i32, i32
  }
}

</mosaic_0001>

<bundles_post_ra>
// kernel: tpu_custom_call.1
= control target key start
LH: loop header
LB: loop body
LE: loop exit
PB: predicated region body
PF: predicated region fallthrough
CT: control target
= control target key end

     0   :  { %vm23_vm0 = vcmask 64512   ;;  %s376_s0 = inlined_call_operand.vmem [shape: f32[8,128], index: 0, kind: input, shape index: {}]   ;;  %s377_s1 = inlined_call_operand.vmem [shape: f32[48,8], index: 1, kind: input, shape index: {}]   ;;  %s378_s2 = inlined_call_operand.vmem [shape: f32[8,48], index: 2, kind: input, shape index: {}]   ;;  %s379_s3 = inlined_call_operand.hbm [shape: f32[8,128], index: 3, kind: output, shape index: {}]  }
   0x1   :  { %v15_v0 = vld [vmem:[%s376_s0] sm:$0xff]  ;;  %v17_v2 = vld [vmem:[%s377_s1 + $0x8] sm:$0xff]  ;;  %v18_v3 = vld [vmem:[%s377_s1 + $0x10] sm:$0xff] }
   0x2   :  { %v16_v1 = vld [vmem:[%s377_s1] sm:$0xff]  ;;  %253 = vmatprep.subr.mxu0 %v15_v0 }
   0x3   :  { %255 = vmatprep.mubr.msk.f32.mxu0 %vm23_vm0, %v16_v1  ;;  %254 = vmatpush3.msra.mxu0 %v15_v0 }
   0x4   :  { %8 = vsyncpa [#allocation3], 0  ;;  %256 = vmatmul.mubr.msk.f32.vlgmr.msra.gmra.mrb[0].mxu0 %vm23_vm0, %v17_v2  ;;  %v19_v4 = vld [vmem:[%s377_s1 + $0x18] sm:$0xff]  ;;  %v20_v5 = vld [vmem:[%s377_s1 + $0x20] sm:$0xff]  ;;  %v316_v7 = vmov 0.0|0.0   ;;  %vm317_vm1 = vmmov 0  }
   0x5   :  { %258 = vmatprep.mubr.msk.f32.mxu0 %vm23_vm0, %v18_v3  ;;  %v21_v6 = vld [vmem:[%s377_s1 + $0x28] sm:$0xff]  ;;  %279 = vmatprep.subr.bf16.mxu1 %v316_v7  ;;  %v318_v8 = vmov 0.0   ;;  %v22_v24 = vld [vmem:[%s378_s2] sm:$0xff]  ;;  %vm143_vm2 = vcmask 392192   ;;  %s319_s26 = smov [#allocation2]  }
   0x6   :  { %276 = vmatprep.mubr.msk.f32.mxu1 %vm317_vm1, %v318_v8  ;;  %s224_s27 = sshll.u32 %s319_s26, 4  ;;  %s225_s27 = int_to_ptr.vmem [resolvable:$true] %s224_s27 }
   0x7   :  { %s292_s28 = scalar_lea.vmem %s225_s27, 128  ;;  %p297_p1 = scmp.lt.s32.totalorder %s225_s27, %s225_s27 }
   0x8   :  { %259 = vmatmul.mubr.msk.f32.gmra.mrb[2].mxu0 %vm23_vm0, %v19_v4  ;;  %p293_p0 = scmp.ne.s32.totalorder %s225_s27, %s292_s28  ;;  %p298_p2 = scmp.lt.s32.totalorder %s292_s28, %s292_s28 }
   0x9   :  { %261 = vmatprep.mubr.msk.f32.mxu0 %vm23_vm0, %v20_v5 }
   0xa   :  { %p299_p3 = por %p298_p2, %p297_p1 }
   0xc   :  { %262 = vmatmul.mubr.msk.f32.gmra.mrb[4].mxu0 %vm23_vm0, %v21_v6  ;;  %p300_p4 = pnand %p299_p3, %p293_p0 }
  0xd7   :  { %v257_v9 = vpop.f32.mrb[0].mxu0 }
  0xd8   :  { %v138_v10 = vmax.f32 %v257_v9, 0.0  ;;  %v108_v11 = vpop.f32.mrb[1].mxu0 }
  0xd9   :  { %v137_v12 = vmax.f32 %v108_v11, 0.0 }
  0xdb   :  { %v260_v13 = vpop.f32.mrb[2].mxu0  ;;  %v280_v14 = vpack.c.bf16 %v138_v10, %v137_v12 }
  0xdc   :  { %v140_v15 = vmax.f32 %v260_v13, 0.0  ;;  %v118_v16 = vpop.f32.mrb[3].mxu0 }
  0xdd   :  { %v139_v17 = vmax.f32 %v118_v16, 0.0  ;;  %281 = vmatpush3.bf16.msra.mxu1 %v280_v14 }
  0xde   :  { %282 = vmatprep.subr.bf16.mxu1 %v316_v7 }
  0xdf   :  { %v283_v18 = vpack.c.bf16 %v140_v15, %v139_v17  ;;  %v263_v19 = vpop.f32.mrb[4].mxu0 }
  0xe0   :  { %v142_v20 = vmax.f32 %v263_v19, 0.0  ;;  %v128_v21 = vpop.f32.mrb[5].mxu0 }
  0xe1   :  { %v141_v22 = vmax.f32 %v128_v21, 0.0  ;;  %284 = vmatpush3.bf16.msra.mxu1 %v283_v18 }
  0xe2   :  { %285 = vmatprep.subr.bf16.mxu1 %v316_v7 }
  0xe3   :  { %v286_v23 = vpack.c.bf16 %v142_v20, %v141_v22 }
  0xe5   :  { %287 = vmatpush3.bf16.msra.mxu1 %v286_v23 }
  0xe8   :  { %277 = vmatmul.mubr.msk.f32.vlgmr.msra.gmra.mrb[0].mxu1 %vm143_vm2, %v22_v24 }
 0x1bb   :  { %v213_v25 = vpop.f32.mrb[0].mxu1 }
 0x1bc   :  { %217 = vst [vmem:[#allocation2] sm:$0xff] %v213_v25  ;;  %v278_v26 = vpop.f32.mrb[1].mxu1 }
 0x1bd   :  { %303 = shalt.err (!%p300_p4)
}
 0x1be   :  { %s304_s4 = scalar_lea.hbm %s379_s3, 128 }
 0x1bf   :  { %p305_p5 = scmp.ne.s32.totalorder %s379_s3, %s304_s4  ;;  %p308_p6 = scmp.lt.u32.totalorder %s304_s4, %s379_s3 }
 0x1c1   :  { %p310_p7 = pnand %p308_p6, %p305_p5 }
 0x1c3   :  { %313 = shalt.err (!%p310_p7)
}
 0x1c4   :  { %227 = dma.vmem_to_hbm [thread:$0]  %s225_s27, 128, %s379_s3, [#allocation3]  }
 0x1c5   :  { %314 = dma.done.wait [#allocation3], 128  }
 0x1c6   :  { %315 = vsyncadd [#allocation3], 4294967168 }
 0x1c7   :  { %231 = vsyncpa [#allocation3], 1 }

</bundles_post_ra>
